<compile_context>
chip_gen: v7x
topology: tpu7x:2x2x1
jax: 0.10.0
libtpu: 0.0.40
codegen_flags: <defaults>
</compile_context>

<pallas_src>
import jax
import jax.numpy as jnp
from jax.experimental import pallas as pl
from jax.experimental.pallas import tpu as pltpu


def sameblock2d(x, w_hwio, conv_bias, bn_gamma, bn_beta, bn_mean, bn_var,
                eps=1e-5, out_dtype=jnp.bfloat16, max_step_bytes=28 << 20):
    """Fused Conv2d(3x3, pad=1) + BatchNorm2d (inference) + ReLU.

    x:         (N, H, W, Cin)   NHWC (TPU-friendly layout)
    w_hwio:    (3, 3, Cin, Cout)
    conv_bias, bn_gamma, bn_beta, bn_mean, bn_var: (Cout,)
    returns    (N, H, W, Cout) in out_dtype
    """
    N, H, W, Cin = x.shape
    KH, KW, Cin2, Cout = w_hwio.shape
    assert (KH, KW) == (3, 3) and Cin2 == Cin

    compute_dtype = jnp.bfloat16
    in_bytes = jnp.dtype(compute_dtype).itemsize
    out_bytes = jnp.dtype(out_dtype).itemsize

    # Lane-dense output channels (multiple of 128) -> unmasked vector stores.
    Cout_p = ((Cout + 127) // 128) * 128

    # Fold conv bias + inference BatchNorm into ONE per-channel scale/bias:
    #   y = scale * conv_nobias(x) + bias ; then ReLU.
    inv_std = jax.lax.rsqrt(bn_var.astype(jnp.float32) + eps)
    scale = bn_gamma.astype(jnp.float32) * inv_std
    bias = (bn_beta.astype(jnp.float32)
            + (conv_bias.astype(jnp.float32) - bn_mean.astype(jnp.float32)) * scale)
    if Cout_p != Cout:
        scale = jnp.pad(scale, (0, Cout_p - Cout))
        bias = jnp.pad(bias, (0, Cout_p - Cout))
    scale = scale.reshape(1, Cout_p)
    bias = bias.reshape(1, Cout_p)

    # Weights: pad Cout, pack the dx taps into the contraction dim.
    # w3[dy, dx*Cin + ci, co] == w_hwio[dy, dx, ci, co]
    w_p = w_hwio
    if Cout_p != Cout:
        w_p = jnp.pad(w_p, ((0, 0), (0, 0), (0, 0), (0, Cout_p - Cout)))
    w3 = w_p.astype(compute_dtype).reshape(3, 3 * Cin, Cout_p)

    # ---- VMEM budgeting: choose Cout tile width + spatial band height. ----
    def step_bytes(th, tc):
        br_in = (th + 2) * W
        br_out = th * W
        return (2 * br_in * 3 * Cin * in_bytes       # input band  (double buffered)
                + 2 * 3 * 3 * Cin * tc * in_bytes    # weights     (double buffered)
                + 2 * 2 * tc * 4                     # scale/bias  (double buffered)
                + 2 * br_out * tc * out_bytes        # output band (double buffered)
                + br_out * tc * 4)                   # f32 accumulator scratch

    tc = 128                                         # Cout_p is always a mult. of 128
    # Guarantee >= 2 parallel grid steps (megacore) even at N=1, single Cout tile.
    min_nb = 2 if (N * (Cout_p // tc) < 2 and H >= 2) else 1
    nb = 0
    for cand in range(min_nb, H + 1):
        if H % cand == 0 and step_bytes(H // cand, tc) <= max_step_bytes:
            nb = cand
            break
    if nb == 0:
        nb = H                                       # best effort: 1-row bands
    TH = H // nb
    # v5e/v6e have VMEM headroom: widen the Cout tile to amortize per-step overhead.
    if (Cout_p % 256 == 0 and N * nb * (Cout_p // 256) >= 2
            and step_bytes(TH, 256) <= max_step_bytes):
        tc = 256
    n_ct = Cout_p // tc

    needed = step_bytes(TH, tc)
    vmem_limit = int(max(32 << 20, min(needed + needed // 2 + (4 << 20), 100 << 20)))

    # ---- Input prep: one pad + one dx-pack gather (fused by XLA). ----
    xb = x.astype(compute_dtype)
    xp = jnp.pad(xb, ((0, 0), (1, 1), (1, 1), (0, 0)))            # (N, H+2, W+2, Cin)
    # dx-packed operand: channel index = dx*Cin + ci  ->  K = 3*Cin per dy tap.
    x3 = jnp.concatenate([xp[:, :, d:d + W, :] for d in range(3)], axis=-1)
    if nb == 1:
        x3b = x3.reshape(N, 1, (H + 2) * W, 3 * Cin)
    else:
        # Row bands with a 2-row halo, materialized so BlockSpec dims stay full-extent.
        x3b = jnp.stack([x3[:, b * TH:b * TH + TH + 2] for b in range(nb)], axis=1)
        x3b = x3b.reshape(N, nb, (TH + 2) * W, 3 * Cin)

    BR_in = (TH + 2) * W
    BR_out = TH * W

    def kernel(x_ref, w_ref, s_ref, b_ref, o_ref, acc_ref):
        # x_ref: (1, 1, BR_in, 3*Cin)   w_ref: (3, 3*Cin, tc)
        # s_ref/b_ref: (1, tc)          o_ref: (1, 1, BR_out, tc)
        # acc_ref: (BR_out, tc) f32 scratch
        for dy in range(3):              # static unroll: 3 MXU matmuls with K = 3*Cin
            # Offsets 0 / W / 2W are sublane-aligned when W % 8 == 0 (no slab copies).
            xs = x_ref[0, 0, dy * W:dy * W + BR_out, :]
            contrib = jnp.dot(xs, w_ref[dy], preferred_element_type=jnp.float32)
            if dy == 0:
                acc_ref[...] = contrib
            else:
                acc_ref[...] += contrib  # MRB in-place accumulate path on v7x
        # Fused per-channel scale/bias + ReLU epilogue (single FMA + max).
        o_ref[0, 0] = jnp.maximum(acc_ref[...] * s_ref[...] + b_ref[...],
                                  0.0).astype(o_ref.dtype)

    out = pl.pallas_call(
        kernel,
        out_shape=jax.ShapeDtypeStruct((N, nb, BR_out, Cout_p), out_dtype),
        grid_spec=pltpu.PrefetchScalarGridSpec(
            num_scalar_prefetch=0,
            grid=(N, nb, n_ct),          # Cout tiles innermost: input band stays resident
            in_specs=[
                pl.BlockSpec((1, 1, BR_in, 3 * Cin), lambda n, b, j: (n, b, 0, 0)),
                pl.BlockSpec((3, 3 * Cin, tc), lambda n, b, j: (0, 0, j)),
                pl.BlockSpec((1, tc), lambda n, b, j: (0, j)),
                pl.BlockSpec((1, tc), lambda n, b, j: (0, j)),
            ],
            out_specs=pl.BlockSpec((1, 1, BR_out, tc), lambda n, b, j: (n, b, 0, j)),
            scratch_shapes=[pltpu.VMEM((BR_out, tc), jnp.float32)],
        ),
        compiler_params=pltpu.CompilerParams(
            dimension_semantics=("parallel", "parallel", "parallel"),
            vmem_limit_bytes=vmem_limit),
    )(x3b, w3, scale, bias)

    y = out.reshape(N, H, W, Cout_p)     # free: band-major layout == row-major layout
    if Cout_p != Cout:
        # TODO(synk): fuse this channel crop into the downstream consumer.
        y = y[..., :Cout]
    return y


def sameblock2d_ref(x, w_hwio, conv_bias, bn_gamma, bn_beta, bn_mean, bn_var,
                    eps=1e-5):
    """Pure-JAX f32 reference mirroring the PyTorch forward (eval-mode BN)."""
    y = jax.lax.conv_general_dilated(
        x, w_hwio, window_strides=(1, 1), padding=((1, 1), (1, 1)),
        dimension_numbers=("NHWC", "HWIO", "NHWC"),
        precision=jax.lax.Precision.HIGHEST)
    y = y + conv_bias
    y = (y - bn_mean) * jax.lax.rsqrt(bn_var + eps) * bn_gamma + bn_beta
    return jnp.maximum(y, 0.0)


if __name__ == "__main__":
    key = jax.random.PRNGKey(0)
    ks = jax.random.split(key, 7)

    N, H, W, Cin, Cout = 2, 16, 16, 8, 16
    x = jax.random.normal(ks[0], (N, H, W, Cin), dtype=jnp.float32)
    w = 0.1 * jax.random.normal(ks[1], (3, 3, Cin, Cout), dtype=jnp.float32)
    conv_b = 0.1 * jax.random.normal(ks[2], (Cout,), dtype=jnp.float32)
    gamma = 1.0 + 0.1 * jax.random.normal(ks[3], (Cout,), dtype=jnp.float32)
    beta = 0.1 * jax.random.normal(ks[4], (Cout,), dtype=jnp.float32)
    mean = 0.1 * jax.random.normal(ks[5], (Cout,), dtype=jnp.float32)
    var = jnp.abs(1.0 + 0.1 * jax.random.normal(ks[6], (Cout,), dtype=jnp.float32))

    ref = sameblock2d_ref(x, w, conv_b, gamma, beta, mean, var)

    # Default path: single spatial band, Cout padded to one lane-dense 128 tile.
    out = jax.block_until_ready(sameblock2d(x, w, conv_b, gamma, beta, mean, var))
    assert out.shape == ref.shape == (N, H, W, Cout), (out.shape, ref.shape)
    err = float(jnp.max(jnp.abs(out.astype(jnp.float32) - ref)))
    assert jnp.allclose(out.astype(jnp.float32), ref, atol=5e-2, rtol=5e-2), err

    # Banded path: a small VMEM budget forces the spatial row-band grid axis.
    out_b = jax.block_until_ready(
        sameblock2d(x, w, conv_b, gamma, beta, mean, var, max_step_bytes=200 * 1024))
    err_b = float(jnp.max(jnp.abs(out_b.astype(jnp.float32) - ref)))
    assert jnp.allclose(out_b.astype(jnp.float32), ref, atol=5e-2, rtol=5e-2), err_b

    print("KERNEL_OK")
</pallas_src>

<mosaic_0001>
module attributes {stable_mosaic.version = 11 : i64} {
  func.func @kernel(%arg0: i32, %arg1: i32, %arg2: i32, %arg3: memref<1x1x288x24xbf16, #tpu.memory_space<vmem>>, %arg4: memref<3x24x128xbf16, #tpu.memory_space<vmem>>, %arg5: memref<1x128xf32, #tpu.memory_space<vmem>>, %arg6: memref<1x128xf32, #tpu.memory_space<vmem>>, %arg7: memref<1x1x256x128xbf16, #tpu.memory_space<vmem>>, %arg8: memref<256x128xf32, #tpu.memory_space<vmem>>) attributes {dimension_semantics = [#tpu.dimension_semantics<parallel>, #tpu.dimension_semantics<parallel>, #tpu.dimension_semantics<parallel>], iteration_bounds = array<i64: 2, 1, 1>, scalar_prefetch = 0 : i64, scratch_operands = 1 : i64, tpu.core_type = #tpu.core_type<tc>, window_params = [{transform_indices = @transform_0, window_bounds = array<i64: 1, 1, 288, 24>}, {transform_indices = @transform_1, window_bounds = array<i64: 3, 24, 128>}, {transform_indices = @transform_2, window_bounds = array<i64: 1, 128>}, {transform_indices = @transform_3, window_bounds = array<i64: 1, 128>}, {transform_indices = @transform_4, window_bounds = array<i64: 1, 1, 256, 128>}]} {
    %c0 = arith.constant 0 : index
    %c0_0 = arith.constant 0 : index
    %c0_1 = arith.constant 0 : index
    %c0_2 = arith.constant 0 : index
    %0 = vector.load %arg3[%c0, %c0_0, %c0_1, %c0_2] : memref<1x1x288x24xbf16, #tpu.memory_space<vmem>>, vector<1x1x256x24xbf16>
    %1 = vector.shape_cast %0 : vector<1x1x256x24xbf16> to vector<256x24xbf16>
    %c0_3 = arith.constant 0 : index
    %c0_4 = arith.constant 0 : index
    %c0_5 = arith.constant 0 : index
    %2 = vector.load %arg4[%c0_3, %c0_4, %c0_5] : memref<3x24x128xbf16, #tpu.memory_space<vmem>>, vector<1x24x128xbf16>
    %3 = vector.shape_cast %2 : vector<1x24x128xbf16> to vector<24x128xbf16>
    %cst = arith.constant dense<0.000000e+00> : vector<256x128xf32>
    %4 = tpu.matmul %1, %3, %cst {dimension_numbers = #tpu.dot_dimension_numbers<[1], [0], [0], [1], [0, 0, 1, 1], [], []>} : vector<256x24xbf16>, vector<24x128xbf16>, vector<256x128xf32> -> vector<256x128xf32>
    %c0_6 = arith.constant 0 : index
    %c0_7 = arith.constant 0 : index
    %5 = vector.load %arg8[%c0_6, %c0_7] : memref<256x128xf32, #tpu.memory_space<vmem>>, vector<256x128xf32>
    tpu.vector_store %arg8[%c0_6, %c0_7], %4 {strides = array<i32>} : memref<256x128xf32, #tpu.memory_space<vmem>>, vector<256x128xf32>,
    %c0_8 = arith.constant 0 : index
    %c0_9 = arith.constant 0 : index
    %c16 = arith.constant 16 : index
    %c0_10 = arith.constant 0 : index
    %6 = vector.load %arg3[%c0_8, %c0_9, %c16, %c0_10] : memref<1x1x288x24xbf16, #tpu.memory_space<vmem>>, vector<1x1x256x24xbf16>
    %7 = vector.shape_cast %6 : vector<1x1x256x24xbf16> to vector<256x24xbf16>
    %c1 = arith.constant 1 : index
    %c0_11 = arith.constant 0 : index
    %c0_12 = arith.constant 0 : index
    %8 = vector.load %arg4[%c1, %c0_11, %c0_12] : memref<3x24x128xbf16, #tpu.memory_space<vmem>>, vector<1x24x128xbf16>
    %9 = vector.shape_cast %8 : vector<1x24x128xbf16> to vector<24x128xbf16>
    %cst_13 = arith.constant dense<0.000000e+00> : vector<256x128xf32>
    %10 = tpu.matmul %7, %9, %cst_13 {dimension_numbers = #tpu.dot_dimension_numbers<[1], [0], [0], [1], [0, 0, 1, 1], [], []>} : vector<256x24xbf16>, vector<24x128xbf16>, vector<256x128xf32> -> vector<256x128xf32>
    %c0_14 = arith.constant 0 : index
    %c0_15 = arith.constant 0 : index
    %11 = vector.load %arg8[%c0_14, %c0_15] : memref<256x128xf32, #tpu.memory_space<vmem>>, vector<256x128xf32>
    %12 = arith.addf %11, %10 : vector<256x128xf32>
    %c0_16 = arith.constant 0 : index
    %c0_17 = arith.constant 0 : index
    %13 = vector.load %arg8[%c0_16, %c0_17] : memref<256x128xf32, #tpu.memory_space<vmem>>, vector<256x128xf32>
    tpu.vector_store %arg8[%c0_16, %c0_17], %12 {strides = array<i32>} : memref<256x128xf32, #tpu.memory_space<vmem>>, vector<256x128xf32>,
    %c0_18 = arith.constant 0 : index
    %c0_19 = arith.constant 0 : index
    %c32 = arith.constant 32 : index
    %c0_20 = arith.constant 0 : index
    %14 = vector.load %arg3[%c0_18, %c0_19, %c32, %c0_20] : memref<1x1x288x24xbf16, #tpu.memory_space<vmem>>, vector<1x1x256x24xbf16>
    %15 = vector.shape_cast %14 : vector<1x1x256x24xbf16> to vector<256x24xbf16>
    %c2 = arith.constant 2 : index
    %c0_21 = arith.constant 0 : index
    %c0_22 = arith.constant 0 : index
    %16 = vector.load %arg4[%c2, %c0_21, %c0_22] : memref<3x24x128xbf16, #tpu.memory_space<vmem>>, vector<1x24x128xbf16>
    %17 = vector.shape_cast %16 : vector<1x24x128xbf16> to vector<24x128xbf16>
    %cst_23 = arith.constant dense<0.000000e+00> : vector<256x128xf32>
    %18 = tpu.matmul %15, %17, %cst_23 {dimension_numbers = #tpu.dot_dimension_numbers<[1], [0], [0], [1], [0, 0, 1, 1], [], []>} : vector<256x24xbf16>, vector<24x128xbf16>, vector<256x128xf32> -> vector<256x128xf32>
    %c0_24 = arith.constant 0 : index
    %c0_25 = arith.constant 0 : index
    %19 = vector.load %arg8[%c0_24, %c0_25] : memref<256x128xf32, #tpu.memory_space<vmem>>, vector<256x128xf32>
    %20 = arith.addf %19, %18 : vector<256x128xf32>
    %c0_26 = arith.constant 0 : index
    %c0_27 = arith.constant 0 : index
    %21 = vector.load %arg8[%c0_26, %c0_27] : memref<256x128xf32, #tpu.memory_space<vmem>>, vector<256x128xf32>
    tpu.vector_store %arg8[%c0_26, %c0_27], %20 {strides = array<i32>} : memref<256x128xf32, #tpu.memory_space<vmem>>, vector<256x128xf32>,
    %c0_28 = arith.constant 0 : index
    %c0_29 = arith.constant 0 : index
    %22 = vector.load %arg8[%c0_28, %c0_29] : memref<256x128xf32, #tpu.memory_space<vmem>>, vector<256x128xf32>
    %c0_30 = arith.constant 0 : index
    %c0_31 = arith.constant 0 : index
    %23 = vector.load %arg5[%c0_30, %c0_31] : memref<1x128xf32, #tpu.memory_space<vmem>>, vector<1x128xf32>
    %24 = vector.broadcast %23 : vector<1x128xf32> to vector<256x128xf32>
    %25 = arith.mulf %22, %24 : vector<256x128xf32>
    %c0_32 = arith.constant 0 : index
    %c0_33 = arith.constant 0 : index
    %26 = vector.load %arg6[%c0_32, %c0_33] : memref<1x128xf32, #tpu.memory_space<vmem>>, vector<1x128xf32>
    %27 = vector.broadcast %26 : vector<1x128xf32> to vector<256x128xf32>
    %28 = arith.addf %25, %27 : vector<256x128xf32>
    %cst_34 = arith.constant 0.000000e+00 : f32
    %29 = vector.broadcast %cst_34 : f32 to vector<256x128xf32>
    %30 = arith.maximumf %28, %29 : vector<256x128xf32>
    %31 = arith.truncf %30 : vector<256x128xf32> to vector<256x128xbf16>
    %c0_35 = arith.constant 0 : index
    %c0_36 = arith.constant 0 : index
    %c0_37 = arith.constant 0 : index
    %c0_38 = arith.constant 0 : index
    %32 = vector.load %arg7[%c0_35, %c0_36, %c0_37, %c0_38] : memref<1x1x256x128xbf16, #tpu.memory_space<vmem>>, vector<1x1x256x128xbf16>
    %33 = vector.shape_cast %32 : vector<1x1x256x128xbf16> to vector<256x128xbf16>
    %34 = vector.shape_cast %31 : vector<256x128xbf16> to vector<1x1x256x128xbf16>
    tpu.vector_store %arg7[%c0_35, %c0_36, %c0_37, %c0_38], %34 {strides = array<i32>} : memref<1x1x256x128xbf16, #tpu.memory_space<vmem>>, vector<1x1x256x128xbf16>,
    return
  }
  func.func @transform_0(%arg0: i32, %arg1: i32, %arg2: i32) -> (i32, i32, i32, i32) {
    %c0_i32 = arith.constant 0 : i32
    %c0_i32_0 = arith.constant 0 : i32
    %c0_i32_1 = arith.constant 0 : i32
    return %arg0, %arg1, %c0_i32, %c0_i32_0 : i32, i32, i32, i32
  }
  func.func @transform_1(%arg0: i32, %arg1: i32, %arg2: i32) -> (i32, i32, i32) {
    %c0_i32 = arith.constant 0 : i32
    %c0_i32_0 = arith.constant 0 : i32
    %c0_i32_1 = arith.constant 0 : i32
    return %c0_i32, %c0_i32_0, %arg2 : i32, i32, i32
  }
  func.func @transform_2(%arg0: i32, %arg1: i32, %arg2: i32) -> (i32, i32) {
    %c0_i32 = arith.constant 0 : i32
    %c0_i32_0 = arith.constant 0 : i32
    return %c0_i32, %arg2 : i32, i32
  }
  func.func @transform_3(%arg0: i32, %arg1: i32, %arg2: i32) -> (i32, i32) {
    %c0_i32 = arith.constant 0 : i32
    %c0_i32_0 = arith.constant 0 : i32
    return %c0_i32, %arg2 : i32, i32
  }
  func.func @transform_4(%arg0: i32, %arg1: i32, %arg2: i32) -> (i32, i32, i32, i32) {
    %c0_i32 = arith.constant 0 : i32
    %c0_i32_0 = arith.constant 0 : i32
    return %arg0, %arg1, %c0_i32, %arg2 : i32, i32, i32, i32
  }
}

</mosaic_0001>

<bundles_post_ra>
// kernel: tpu_custom_call.1
= control target key start
LH: loop header
LB: loop body
LE: loop exit
PB: predicated region body
PF: predicated region fallthrough
CT: control target
= control target key end

     0   :  { %9 = vsyncpa [#allocation4], 0  ;;  %s3048_s0 = inlined_call_operand.vmem [shape: bf16[2,1,288,24], index: 0, kind: input, shape index: {}]   ;;  %s3049_s1 = inlined_call_operand.vmem [shape: bf16[3,24,128], index: 1, kind: input, shape index: {}]   ;;  %s3050_s2 = inlined_call_operand.vmem [shape: f32[1,128], index: 2, kind: input, shape index: {}]   ;;  %s3051_s3 = inlined_call_operand.vmem [shape: f32[1,128], index: 3, kind: input, shape index: {}]   ;;  %s3052_s4 = inlined_call_operand.hbm [shape: bf16[2,1,256,128], index: 4, kind: output, shape index: {}]  }
   0x1   :  { %11 = vsyncpa [#allocation4 + $0x1], 0  ;;  %s2698_s15 = smov 0   ;;  %s2700_s16 = smov 0  }
   0x2   :  { %s2702_s17 = smov 0   ;;  %s2704_s18 = smov 0  }
   0x3   :  { %s2706_s19 = smov 0   ;;  %s2708_s20 = smov 0  }
   0x4 LB: > { %s1959_s21 = sadd.s32 4294967295, %s2668_s20   ;;  %s1960_s22 = sadd.s32 4294967294, %s2668_s20   ;;  %s2668_s20 = sphi %s2708_s20, %s17_s20   ;;  %s2664_s19 = sphi %s2706_s19, %s3059_s19   ;;  %s2660_s18 = sphi %s2704_s18, %s3058_s18   ;;  %s2656_s17 = sphi %s2702_s17, %s3057_s17   ;;  %s2652_s16 = sphi %s2700_s16, %s3056_s16   ;;  %s2648_s15 = sphi %s2698_s15, %s3055_s15  }
   0x5   : > { %s36_s23 = sadd.s32 1, %s2664_s19  ;;  %s153_s24 = sadd.s32 1, %s2656_s17 }
   0x6   : > { %p38_p0 = scmp.ge.s32.totalorder %s36_s23, 2  ;;  %p163_p1 = scmp.ne.s32.totalorder %s2656_s17, %s2652_s16 }
   0x7   : > { %p164_p2 = scmp.eq.s32.totalorder %s1959_s21, 1  ;;  %p169_p3 = scmp.ne.s32.totalorder %s2652_s16, %s2648_s15 }
   0x8   : > { %s3061_s23 = smov (%p38_p0, %s36_s23), 0  ;;  %p170_p5 = scmp.eq.s32.totalorder %s1960_s22, 1 }
   0x9   : > { %p2738_p4 = por %p164_p2, %p163_p1  ;;  %s146_s26 = ssub.s32 %s2664_s19, %s3061_s23 }
   0xa   : > { %p1966_p6 = scmp.ge.s32.totalorder %s2668_s20, 1  ;;  %p151_p7 = scmp.eq.s32.totalorder %s146_s26, 0 }
   0xb   : > { %p2745_p8 = por %p170_p5, %p169_p3  ;;  %p219_p9 = scmp.lt.s32.totalorder %s2668_s20, 3 }
   0xc   : > { %s2751_s28 = scalar_select %p151_p7, %s2656_s17, %s153_s24  }
   0xd   : > { %p220_p10 = pnand %p1966_p6, %p219_p9 }
   0xe   : > { %v2536_v0 = vld [vmem:[%s3049_s1] sm:$0xff] (!%p220_p10)   ;;  %vm452_vm0 = vcmask (!%p220_p10), 1043456   ;;  %v2537_v1 = vld [vmem:[%s3049_s1 + $0xc] sm:$0xff] (!%p220_p10)   ;;  %p259_p11 = scmp.lt.s32.totalorder (!%p220_p10), %s2660_s18, 1  ;;  %v2538_v2 = vld [vmem:[%s3049_s1 + $0x8] ss:$0 sps:$4 sm:$0xff] (!%p220_p10)  }
   0xf   : > { %223 = sbr.rel (%p220_p10) target bundleno = 357 (0x165), region = 36  ;;  %2298 = vmatprep.subr.bf16.mxu1 (!%p220_p10), %v2536_v0  ;;  %2334 = vmatprep.subr.bf16.mxu0 (!%p220_p10), %v2537_v1  ;;  %v2539_v3 = vld [vmem:[%s3049_s1 + $0x14] ss:$0 sps:$4 sm:$0xff] (!%p220_p10)   ;;  %v454_v4 = vsel (!%p220_p10), %vm452_vm0, %v2538_v2, 0  ;;  %v2544_v6 = vld [vmem:[%s3049_s1 + $0x18] sm:$0xff] (!%p220_p10)   ;;  %vm403_vm1 = vcmask (!%p220_p10), 195584  }
  0x10   : > { %2299 = vmatpush3.bf16.msra.mxu1 (!%p220_p10), %v2536_v0  ;;  %2335 = vmatpush3.bf16.msra.mxu0 (!%p220_p10), %v2537_v1  ;;  %v823_v5 = vsel (!%p220_p10), %vm452_vm0, %v2539_v3, 0  ;;  %v2553_v9 = vld [vmem:[%s3049_s1 + $0x20] ss:$0 sps:$4 sm:$0xff] (!%p220_p10)   ;;  %s256_s8 = sand.u32 (!%p220_p10), 1, %s2652_s16  }
  0x11   : > { %2474 = vmatprep.subr.msk.bf16.mxu1 (!%p220_p10), %vm452_vm0, %v2538_v2  ;;  %2475 = vmatprep.subr.msk.bf16.mxu0 (!%p220_p10), %vm452_vm0, %v2539_v3  ;;  %v1256_v15 = vsel (!%p220_p10), %vm452_vm0, %v2553_v9, 0  ;;  %s1967_s9 = sshll.u32 (!%p220_p10), %s256_s8, 7 }
  0x12   : > { %s2914_s10 = scalar_lea.vmem (!%p220_p10), [#allocation3], %s1967_s9 }
  0x14   : > { %2301 = vmatpush3.bf16.msra.mxu1 (!%p220_p10), %v454_v4  ;;  %2337 = vmatpush3.bf16.msra.mxu0 (!%p220_p10), %v823_v5 }
  0x15   : > { %2406 = vmatprep.subr.bf16.mxu1 (!%p220_p10), %v2537_v1  ;;  %2370 = vmatprep.subr.bf16.mxu0 (!%p220_p10), %v2544_v6 }
  0x16   : > { %s260_s11 = scalar_select %p259_p11, %s2660_s18, 1 }
  0x18   : > { %s2478_s12 = smul.u32 144, %s260_s11  ;;  %s2148_s11 = sshll.u32 %s2660_s18, 11 }
  0x19   : > { %s2994_s21 = scalar_lea.hbm %s3052_s4, %s2148_s11  ;;  %s3002_s18 = scalar_lea.sflag [#allocation4], %s256_s8 }
  0x1a   : > { %s2777_s24 = scalar_lea.vmem %s3048_s0, %s2478_s12  ;;  %s1834_s12 = sshll.u32 %s2914_s10, 4  ;;  %s2996_s12 = int_to_ptr.vmem [resolvable:$true] %s1834_s12 }
  0x1b   : > { %v2540_v7 = vld [vmem:[%s2777_s24] sm:$0xff]   ;;  %v2541_v8 = vld [vmem:[%s2777_s24 + $0x8] sm:$0xff]   ;;  %v2543_v11 = vld [vmem:[%s2777_s24 + $0x10] sm:$0xff]   ;;  %s2590_s22 = scalar_lea.vmem %s2996_s12, 2048 }
  0x1c   : > { %2302 = vmatprep.mubr.msk.bf16.mxu1 %vm403_vm1, %v2540_v7  ;;  %v2542_v10 = vld [vmem:[%s2777_s24 + $0x8] sm:$0xff]   ;;  %2338 = vmatprep.mubr.msk.bf16.mxu0 %vm403_vm1, %v2541_v8  ;;  %v2545_v12 = vld [vmem:[%s2777_s24 + $0x10] sm:$0xff]   ;;  %v2546_v13 = vld [vmem:[%s2777_s24 + $0x18] sm:$0xff]   ;;  %p2591_p12 = scmp.ne.s32.totalorder %s2996_s12, %s2590_s22 }
  0x1d   : > { %2303 = vmatmul.mubr.msk.bf16.vlgmr.msra.gmra.mrb[0].mxu1 %vm403_vm1, %v2542_v10  ;;  %2339 = vmatmul.mubr.msk.bf16.vlgmr.msra.gmra.mrb[0].mxu0 %vm403_vm1, %v2543_v11  ;;  %v2547_v14 = vld [vmem:[%s2777_s24 + $0x18] sm:$0xff]   ;;  %v2548_v16 = vld [vmem:[%s2777_s24 + $0x20] sm:$0xff]   ;;  %v2550_v18 = vld [vmem:[%s2777_s24 + $0x28] sm:$0xff]  }
  0x1e   : > { %2408 = vmatpush3.bf16.msra.mxu1 %v2537_v1  ;;  %2371 = vmatpush3.bf16.msra.mxu0 %v2544_v6  ;;  %v2549_v17 = vld [vmem:[%s2777_s24 + $0x20] sm:$0xff]   ;;  %v2551_v19 = vld [vmem:[%s2777_s24 + $0x28] sm:$0xff]   ;;  %v2552_v20 = vld [vmem:[%s2777_s24 + $0x30] sm:$0xff]   ;;  %p2592_p13 = pnand %p2591_p12, %p2738_p4 }
  0x1f   : > { %2306 = vmatprep.mubr.msk.bf16.mxu1 %vm403_vm1, %v2545_v12  ;;  %2342 = vmatprep.mubr.msk.bf16.mxu0 %vm403_vm1, %v2546_v13  ;;  %v2554_v21 = vld [vmem:[%s2777_s24 + $0x30] sm:$0xff]   ;;  %v2555_v22 = vld [vmem:[%s2777_s24 + $0x38] sm:$0xff]   ;;  %v2557_v24 = vld [vmem:[%s2777_s24 + $0x40] sm:$0xff]  }
  0x20   : > { %2477 = vmatprep.subr.msk.bf16.mxu0 %vm452_vm0, %v2553_v9  ;;  %2476 = vmatprep.subr.msk.bf16.mxu1 %vm452_vm0, %v2539_v3  ;;  %v2556_v23 = vld [vmem:[%s2777_s24 + $0x38] sm:$0xff]   ;;  %v2558_v25 = vld [vmem:[%s2777_s24 + $0x40] sm:$0xff]   ;;  %v2559_v26 = vld [vmem:[%s2777_s24 + $0x10] sm:$0xff]   ;;  %p2593_p0 = pneg %p2592_p13 }
  0x21   : > { %v2560_v27 = vld [vmem:[%s2777_s24 + $0x48] sm:$0xff]   ;;  %v2561_v28 = vld [vmem:[%s2777_s24 + $0x18] sm:$0xff]   ;;  %v2562_v29 = vld [vmem:[%s2777_s24 + $0x50] sm:$0xff]  }
  0x22   : > { %2409 = vmatpush3.bf16.msra.mxu1 %v823_v5  ;;  %2373 = vmatpush3.bf16.msra.mxu0 %v1256_v15  ;;  %v2563_v30 = vld [vmem:[%s2777_s24 + $0x20] sm:$0xff]   ;;  %v2564_v31 = vld [vmem:[%s2777_s24 + $0x58] sm:$0xff]   ;;  %v2565_v32 = vld [vmem:[%s2777_s24 + $0x28] sm:$0xff]  }
  0x23   : > { %v2566_v33 = vld [vmem:[%s2777_s24 + $0x60] sm:$0xff]   ;;  %v2567_v34 = vld [vmem:[%s2777_s24 + $0x30] sm:$0xff]   ;;  %v2568_v35 = vld [vmem:[%s2777_s24 + $0x68] sm:$0xff]  }
  0x24   : > { %v2569_v36 = vld [vmem:[%s2777_s24 + $0x38] sm:$0xff]   ;;  %v2570_v37 = vld [vmem:[%s2777_s24 + $0x70] sm:$0xff]   ;;  %v2571_v38 = vld [vmem:[%s2777_s24 + $0x40] sm:$0xff]  }
  0x25   : > { %2307 = vmatmul.mubr.msk.bf16.gmra.mrb[4].mxu1 %vm403_vm1, %v2547_v14  ;;  %2343 = vmatmul.mubr.msk.bf16.gmra.mrb[4].mxu0 %vm403_vm1, %v2548_v16  ;;  %v2572_v39 = vld [vmem:[%s2777_s24 + $0x78] sm:$0xff]   ;;  %v2573_v40 = vld [vmem:[%s2777_s24 + $0x48] sm:$0xff]   ;;  %v2575_v42 = vld [vmem:[%s2777_s24 + $0x50] sm:$0xff]  }
  0x26   : > { %2310 = vmatprep.mubr.msk.bf16.mxu1 %vm403_vm1, %v2549_v17  ;;  %2346 = vmatprep.mubr.msk.bf16.mxu0 %vm403_vm1, %v2550_v18  ;;  %v2574_v41 = vld [vmem:[%s2777_s24 + $0x48] sm:$0xff]   ;;  %v2576_v43 = vld [vmem:[%s2777_s24 + $0x50] sm:$0xff]   ;;  %v2577_v44 = vld [vmem:[%s2777_s24 + $0x58] sm:$0xff]  }
  0x27   : > { %v2578_v45 = vld [vmem:[%s2777_s24 + $0x58] sm:$0xff]   ;;  %v2579_v46 = vld [vmem:[%s2777_s24 + $0x60] sm:$0xff]   ;;  %v2581_v48 = vld [vmem:[%s2777_s24 + $0x68] sm:$0xff]  }
  0x28   : > { %v2580_v47 = vld [vmem:[%s2777_s24 + $0x60] sm:$0xff]   ;;  %v2582_v49 = vld [vmem:[%s2777_s24 + $0x68] sm:$0xff]   ;;  %v2583_v50 = vld [vmem:[%s2777_s24 + $0x70] sm:$0xff]  }
  0x29   : > { %v2584_v51 = vld [vmem:[%s2777_s24 + $0x70] sm:$0xff]   ;;  %v2585_v52 = vld [vmem:[%s2777_s24 + $0x78] sm:$0xff]   ;;  %v2587_v54 = vld [vmem:[%s2777_s24 + $0x80] sm:$0xff]  }
  0x2a   : > { %v2586_v53 = vld [vmem:[%s2777_s24 + $0x78] sm:$0xff]   ;;  %v2588_v55 = vld [vmem:[%s2777_s24 + $0x80] sm:$0xff]   ;;  %v2589_v56 = vld [vmem:[%s2777_s24 + $0x88] sm:$0xff]   ;;  %s2670_s24 = smov [#allocation3]  }
  0x2b   : > { %v2894_v10 = vld [vmem:[%s3050_s2] ss:$0 sm:$0xff]  ;;  %s2594_s26 = sshll.u32 %s2670_s24, 4  ;;  %s2595_s26 = int_to_ptr.vmem [resolvable:$false] %s2594_s26 }
  0x2c   : > { %v2899_v13 = vld [vmem:[%s3051_s3] ss:$0 sm:$0xff]  ;;  %s2596_s29 = scalar_lea.vmem %s2595_s26, 4096  ;;  %p2597_p1 = scmp.lt.s32.totalorder %s2996_s12, %s2595_s26 }
  0x2d   : > { %2311 = vmatmul.mubr.msk.bf16.gmra.mrb[8].mxu1 %vm403_vm1, %v2551_v19  ;;  %2347 = vmatmul.mubr.msk.bf16.gmra.mrb[8].mxu0 %vm403_vm1, %v2552_v20  ;;  %p2598_p2 = scmp.lt.s32.totalorder %s2596_s29, %s2590_s22 }
  0x2e   : > { %2314 = vmatprep.mubr.msk.bf16.mxu1 %vm403_vm1, %v2554_v21  ;;  %2350 = vmatprep.mubr.msk.bf16.mxu0 %vm403_vm1, %v2555_v22 }
  0x2f   : > { %p2599_p3 = por %p2598_p2, %p2597_p1 }
  0x31   : > { %p2600_p5 = pnand %p2599_p3, %p2593_p0 }
  0x35   : > { %2315 = vmatmul.mubr.msk.bf16.gmra.mrb[12].mxu1 %vm403_vm1, %v2556_v23  ;;  %2351 = vmatmul.mubr.msk.bf16.gmra.mrb[12].mxu0 %vm403_vm1, %v2557_v24 }
  0x36   : > { %2318 = vmatprep.mubr.msk.bf16.mxu1 %vm403_vm1, %v2558_v25  ;;  %2374 = vmatprep.mubr.msk.bf16.mxu0 %vm403_vm1, %v2559_v26 }
  0x3d   : > { %2319 = vmatmul.mubr.msk.bf16.gmra.mrb[16].mxu1 %vm403_vm1, %v2560_v27  ;;  %2375 = vmatmul.mubr.msk.bf16.vlgmr.msra.gmra.mrb[0].mxu0 %vm403_vm1, %v2561_v28 }
  0x3e   : > { %2322 = vmatprep.mubr.msk.bf16.mxu1 %vm403_vm1, %v2562_v29  ;;  %2378 = vmatprep.mubr.msk.bf16.mxu0 %vm403_vm1, %v2563_v30 }
  0x45   : > { %2323 = vmatmul.mubr.msk.bf16.gmra.mrb[20].mxu1 %vm403_vm1, %v2564_v31  ;;  %2379 = vmatmul.mubr.msk.bf16.gmra.mrb[4].mxu0 %vm403_vm1, %v2565_v32 }
  0x46   : > { %2326 = vmatprep.mubr.msk.bf16.mxu1 %vm403_vm1, %v2566_v33  ;;  %2382 = vmatprep.mubr.msk.bf16.mxu0 %vm403_vm1, %v2567_v34 }
  0x4d   : > { %2327 = vmatmul.mubr.msk.bf16.gmra.mrb[24].mxu1 %vm403_vm1, %v2568_v35  ;;  %2383 = vmatmul.mubr.msk.bf16.gmra.mrb[8].mxu0 %vm403_vm1, %v2569_v36 }
  0x4e   : > { %2330 = vmatprep.mubr.msk.bf16.mxu1 %vm403_vm1, %v2570_v37  ;;  %2386 = vmatprep.mubr.msk.bf16.mxu0 %vm403_vm1, %v2571_v38 }
  0x55   : > { %2331 = vmatmul.mubr.msk.bf16.gmra.mrb[28].mxu1 %vm403_vm1, %v2572_v39  ;;  %2387 = vmatmul.mubr.msk.bf16.gmra.mrb[12].mxu0 %vm403_vm1, %v2573_v40 }
  0x56   : > { %2354 = vmatprep.mubr.msk.bf16.mxu1 %vm403_vm1, %v2574_v41  ;;  %2390 = vmatprep.mubr.msk.bf16.mxu0 %vm403_vm1, %v2575_v42 }
  0x5d   : > { %2355 = vmatmul.mubr.msk.bf16.vlgmr.msra.gmra.mrb[16].mxu1 %vm403_vm1, %v2576_v43  ;;  %2391 = vmatmul.mubr.msk.bf16.gmra.mrb[16].mxu0 %vm403_vm1, %v2577_v44 }
  0x5e   : > { %2358 = vmatprep.mubr.msk.bf16.mxu1 %vm403_vm1, %v2578_v45  ;;  %2394 = vmatprep.mubr.msk.bf16.mxu0 %vm403_vm1, %v2579_v46 }
  0x65   : > { %2359 = vmatmul.mubr.msk.bf16.gmra.mrb[20].mxu1 %vm403_vm1, %v2580_v47  ;;  %2395 = vmatmul.mubr.msk.bf16.gmra.mrb[20].mxu0 %vm403_vm1, %v2581_v48 }
  0x66   : > { %2362 = vmatprep.mubr.msk.bf16.mxu1 %vm403_vm1, %v2582_v49  ;;  %2398 = vmatprep.mubr.msk.bf16.mxu0 %vm403_vm1, %v2583_v50 }
  0x6d   : > { %2363 = vmatmul.mubr.msk.bf16.gmra.mrb[24].mxu1 %vm403_vm1, %v2584_v51  ;;  %2399 = vmatmul.mubr.msk.bf16.gmra.mrb[24].mxu0 %vm403_vm1, %v2585_v52 }
  0x6e   : > { %2366 = vmatprep.mubr.msk.bf16.mxu1 %vm403_vm1, %v2586_v53  ;;  %2402 = vmatprep.mubr.msk.bf16.mxu0 %vm403_vm1, %v2587_v54 }
  0x75   : > { %2367 = vmatmul.mubr.msk.bf16.gmra.mrb[28].mxu1 %vm403_vm1, %v2588_v55  ;;  %2403 = vmatmul.mubr.msk.bf16.gmra.mrb[28].mxu0 %vm403_vm1, %v2589_v56 }
  0xf0   : > { %v2304_v57 = vpop.f32.mrb[0].mxu1 }
  0xf1   : > { %v490_v58 = vpop.f32.mrb[1].mxu1 }
  0xf2   : > { %v2305_v59 = vpop.f32.mrb[2].mxu1 }
  0xf3   : > { %v493_v60 = vpop.f32.mrb[3].mxu1 }
  0xf8   : > { %v2308_v61 = vpop.f32.mrb[4].mxu1 }
  0xf9   : > { %v506_v62 = vpop.f32.mrb[5].mxu1 }
  0xfa   : > { %v2309_v63 = vpop.f32.mrb[6].mxu1 }
  0xfb   : > { %v509_v0 = vpop.f32.mrb[7].mxu1 }
 0x100   : > { %v2312_v1 = vpop.f32.mrb[8].mxu1 }
 0x101   : > { %v522_v2 = vpop.f32.mrb[9].mxu1 }
 0x102   : > { %v2313_v3 = vpop.f32.mrb[10].mxu1 }
 0x103   : > { %v2881_v4 = vpop.f32.mrb[11].mxu1 }
 0x108   : > { %v2883_v5 = vpop.f32.mrb[12].mxu1 }
 0x109   : > { %v2885_v6 = vpop.f32.mrb[13].mxu1 }
 0x10a   : > { %v2887_v7 = vpop.f32.mrb[14].mxu1 }
 0x10b   : > { %v2889_v8 = vpop.f32.mrb[15].mxu1 }
 0x110   : > { %v2376_v9 = vpop.f32.mrb[0].mxu0 }
 0x111   : > { %v2410_v11 = vadd.f32 %v2376_v9, %v2304_v57  ;;  %v1292_v12 = vpop.f32.mrb[1].mxu0 }
 0x112   : > { %v2411_v14 = vadd.f32 %v1292_v12, %v490_v58  ;;  %v2377_v15 = vpop.f32.mrb[2].mxu0 }
 0x113   : > { %v1556_v16 = vmul.f32 %v2410_v11, %v2894_v10  ;;  %v2412_v17 = vadd.f32 %v2377_v15, %v2305_v59  ;;  %v1295_v18 = vpop.f32.mrb[3].mxu0 }
 0x114   : > { %v1554_v19 = vmul.f32 %v2411_v14, %v2894_v10  ;;  %v2413_v20 = vadd.f32 %v1295_v18, %v493_v60 }
 0x115   : > { %v1595_v21 = vadd.f32 %v2899_v13, %v1556_v16  ;;  %v1557_v22 = vmul.f32 %v2412_v17, %v2894_v10 }
 0x116   : > { %v1593_v23 = vadd.f32 %v2899_v13, %v1554_v19  ;;  %v1555_v24 = vmul.f32 %v2413_v20, %v2894_v10 }
 0x117   : > { %v1596_v25 = vadd.f32 %v2899_v13, %v1557_v22  ;;  %v1627_v28 = vmax.f32 %v1595_v21, 0.0 }
 0x118   : > { %v1594_v26 = vadd.f32 %v2899_v13, %v1555_v24  ;;  %v2380_v27 = vpop.f32.mrb[4].mxu0  ;;  %v1625_v32 = vmax.f32 %v1593_v23, 0.0 }
 0x119   : > { %v1628_v29 = vmax.f32 %v1596_v25, 0.0  ;;  %v2414_v30 = vadd.f32 %v2380_v27, %v2308_v61  ;;  %v1308_v31 = vpop.f32.mrb[5].mxu0 }
 0x11a   : > { %v1626_v33 = vmax.f32 %v1594_v26, 0.0  ;;  %v2415_v34 = vadd.f32 %v1308_v31, %v506_v62  ;;  %v2381_v35 = vpop.f32.mrb[6].mxu0 }
 0x11b   : > { %v2157_v36 = vpack.c.bf16 %v1628_v29, %v1627_v28  ;;  %v1560_v37 = vmul.f32 %v2414_v30, %v2894_v10  ;;  %v2416_v38 = vadd.f32 %v2381_v35, %v2309_v63  ;;  %v1311_v39 = vpop.f32.mrb[7].mxu0 }
 0x11c   : > { %v2152_v40 = vpack.c.bf16 %v1626_v33, %v1625_v32  ;;  %v1558_v41 = vmul.f32 %v2415_v34, %v2894_v10  ;;  %v2417_v42 = vadd.f32 %v1311_v39, %v509_v0 }
 0x11d   : > { %2229 = vst [vmem:[%s2914_s10 + $0x8] sm:$0xff] %v2157_v36   ;;  %v1599_v43 = vadd.f32 %v2899_v13, %v1560_v37  ;;  %v1561_v44 = vmul.f32 %v2416_v38, %v2894_v10 }
 0x11e   : > { %2153 = vst [vmem:[%s2914_s10] sm:$0xff] %v2152_v40   ;;  %v1597_v45 = vadd.f32 %v2899_v13, %v1558_v41  ;;  %v1559_v46 = vmul.f32 %v2417_v42, %v2894_v10 }
 0x11f   : > { %v1600_v47 = vadd.f32 %v2899_v13, %v1561_v44  ;;  %v1631_v50 = vmax.f32 %v1599_v43, 0.0 }
 0x120   : > { %v1598_v48 = vadd.f32 %v2899_v13, %v1559_v46  ;;  %v2384_v49 = vpop.f32.mrb[8].mxu0  ;;  %v1629_v54 = vmax.f32 %v1597_v45, 0.0 }
 0x121   : > { %v1632_v51 = vmax.f32 %v1600_v47, 0.0  ;;  %v2418_v52 = vadd.f32 %v2384_v49, %v2312_v1  ;;  %v1324_v53 = vpop.f32.mrb[9].mxu0 }
 0x122   : > { %v1630_v55 = vmax.f32 %v1598_v48, 0.0  ;;  %v2419_v56 = vadd.f32 %v1324_v53, %v522_v2  ;;  %v2385_v57 = vpop.f32.mrb[10].mxu0 }
 0x123   : > { %v2167_v58 = vpack.c.bf16 %v1632_v51, %v1631_v50  ;;  %v1564_v59 = vmul.f32 %v2418_v52, %v2894_v10  ;;  %v2420_v60 = vadd.f32 %v2385_v57, %v2313_v3  ;;  %v1327_v61 = vpop.f32.mrb[11].mxu0 }
 0x124   : > { %v2162_v62 = vpack.c.bf16 %v1630_v55, %v1629_v54  ;;  %v1562_v63 = vmul.f32 %v2419_v56, %v2894_v10  ;;  %v2421_v0 = vadd.f32 %v1327_v61, %v2881_v4 }
 0x125   : > { %2231 = vst [vmem:[%s2914_s10 + $0x18] sm:$0xff] %v2167_v58   ;;  %v1603_v9 = vadd.f32 %v2899_v13, %v1564_v59  ;;  %v1565_v1 = vmul.f32 %v2420_v60, %v2894_v10 }
 0x126   : > { %2230 = vst [vmem:[%s2914_s10 + $0x10] sm:$0xff] %v2162_v62   ;;  %v1601_v11 = vadd.f32 %v2899_v13, %v1562_v63  ;;  %v1563_v2 = vmul.f32 %v2421_v0, %v2894_v10 }
 0x127   : > { %v1604_v12 = vadd.f32 %v2899_v13, %v1565_v1  ;;  %v1635_v15 = vmax.f32 %v1603_v9, 0.0 }
 0x128   : > { %v1602_v3 = vadd.f32 %v2899_v13, %v1563_v2  ;;  %v2388_v14 = vpop.f32.mrb[12].mxu0  ;;  %v1633_v18 = vmax.f32 %v1601_v11, 0.0 }
 0x129   : > { %v1636_v16 = vmax.f32 %v1604_v12, 0.0  ;;  %v2422_v4 = vadd.f32 %v2388_v14, %v2883_v5  ;;  %v1340_v17 = vpop.f32.mrb[13].mxu0 }
 0x12a   : > { %v1634_v19 = vmax.f32 %v1602_v3, 0.0  ;;  %v2423_v20 = vadd.f32 %v1340_v17, %v2885_v6  ;;  %v2389_v21 = vpop.f32.mrb[14].mxu0 }
 0x12b   : > { %v2177_v22 = vpack.c.bf16 %v1636_v16, %v1635_v15  ;;  %v1568_v23 = vmul.f32 %v2422_v4, %v2894_v10  ;;  %v2424_v24 = vadd.f32 %v2389_v21, %v2887_v7  ;;  %v1343_v25 = vpop.f32.mrb[15].mxu0 }
 0x12c   : > { %v2172_v26 = vpack.c.bf16 %v1634_v19, %v1633_v18  ;;  %v1566_v27 = vmul.f32 %v2423_v20, %v2894_v10  ;;  %v2425_v28 = vadd.f32 %v1343_v25, %v2889_v8 }
 0x12d   : > { %2233 = vst [vmem:[%s2914_s10 + $0x28] sm:$0xff] %v2177_v22   ;;  %v1607_v5 = vadd.f32 %v2899_v13, %v1568_v23  ;;  %v1569_v29 = vmul.f32 %v2424_v24, %v2894_v10 }
 0x12e   : > { %2232 = vst [vmem:[%s2914_s10 + $0x20] sm:$0xff] %v2172_v26   ;;  %v1605_v6 = vadd.f32 %v2899_v13, %v1566_v27  ;;  %v1567_v30 = vmul.f32 %v2425_v28, %v2894_v10 }
 0x12f   : > { %v1608_v31 = vadd.f32 %v2899_v13, %v1569_v29  ;;  %v1639_v35 = vmax.f32 %v1607_v5, 0.0 }
 0x130   : > { %v2356_v32 = vpop.f32.mrb[16].mxu1  ;;  %v1606_v7 = vadd.f32 %v2899_v13, %v1567_v30  ;;  %v2392_v33 = vpop.f32.mrb[16].mxu0  ;;  %v1637_v39 = vmax.f32 %v1605_v6, 0.0 }
 0x131   : > { %v923_v34 = vpop.f32.mrb[17].mxu1  ;;  %v1640_v36 = vmax.f32 %v1608_v31, 0.0  ;;  %v2426_v8 = vadd.f32 %v2392_v33, %v2356_v32  ;;  %v1356_v37 = vpop.f32.mrb[17].mxu0 }
 0x132   : > { %v2357_v38 = vpop.f32.mrb[18].mxu1  ;;  %v1638_v40 = vmax.f32 %v1606_v7, 0.0  ;;  %v2427_v41 = vadd.f32 %v1356_v37, %v923_v34  ;;  %v2393_v42 = vpop.f32.mrb[18].mxu0 }
 0x133   : > { %v926_v43 = vpop.f32.mrb[19].mxu1  ;;  %v2187_v44 = vpack.c.bf16 %v1640_v36, %v1639_v35  ;;  %v1572_v45 = vmul.f32 %v2426_v8, %v2894_v10  ;;  %v2428_v46 = vadd.f32 %v2393_v42, %v2357_v38  ;;  %v1359_v47 = vpop.f32.mrb[19].mxu0 }
 0x134   : > { %v2182_v48 = vpack.c.bf16 %v1638_v40, %v1637_v39  ;;  %v1570_v49 = vmul.f32 %v2427_v41, %v2894_v10  ;;  %v2429_v50 = vadd.f32 %v1359_v47, %v926_v43 }
 0x135   : > { %2235 = vst [vmem:[%s2914_s10 + $0x38] sm:$0xff] %v2187_v44   ;;  %v1611_v51 = vadd.f32 %v2899_v13, %v1572_v45  ;;  %v1573_v52 = vmul.f32 %v2428_v46, %v2894_v10 }
 0x136   : > { %2234 = vst [vmem:[%s2914_s10 + $0x30] sm:$0xff] %v2182_v48   ;;  %v1609_v53 = vadd.f32 %v2899_v13, %v1570_v49  ;;  %v1571_v54 = vmul.f32 %v2429_v50, %v2894_v10 }
 0x137   : > { %v1612_v55 = vadd.f32 %v2899_v13, %v1573_v52  ;;  %v1643_v60 = vmax.f32 %v1611_v51, 0.0 }
 0x138   : > { %v2360_v56 = vpop.f32.mrb[20].mxu1  ;;  %v1610_v57 = vadd.f32 %v2899_v13, %v1571_v54  ;;  %v2396_v58 = vpop.f32.mrb[20].mxu0  ;;  %v1641_v9 = vmax.f32 %v1609_v53, 0.0 }
 0x139   : > { %v939_v59 = vpop.f32.mrb[21].mxu1  ;;  %v1644_v61 = vmax.f32 %v1612_v55, 0.0  ;;  %v2430_v62 = vadd.f32 %v2396_v58, %v2360_v56  ;;  %v1372_v63 = vpop.f32.mrb[21].mxu0 }
 0x13a   : > { %v2361_v0 = vpop.f32.mrb[22].mxu1  ;;  %v1642_v1 = vmax.f32 %v1610_v57, 0.0  ;;  %v2431_v11 = vadd.f32 %v1372_v63, %v939_v59  ;;  %v2397_v2 = vpop.f32.mrb[22].mxu0 }
 0x13b   : > { %v942_v12 = vpop.f32.mrb[23].mxu1  ;;  %v2197_v3 = vpack.c.bf16 %v1644_v61, %v1643_v60  ;;  %v1576_v14 = vmul.f32 %v2430_v62, %v2894_v10  ;;  %v2432_v15 = vadd.f32 %v2397_v2, %v2361_v0  ;;  %v1375_v16 = vpop.f32.mrb[23].mxu0 }
 0x13c   : > { %v2192_v4 = vpack.c.bf16 %v1642_v1, %v1641_v9  ;;  %v1574_v17 = vmul.f32 %v2431_v11, %v2894_v10  ;;  %v2433_v18 = vadd.f32 %v1375_v16, %v942_v12 }
 0x13d   : > { %2237 = vst [vmem:[%s2914_s10 + $0x48] sm:$0xff] %v2197_v3   ;;  %v1615_v19 = vadd.f32 %v2899_v13, %v1576_v14  ;;  %v1577_v20 = vmul.f32 %v2432_v15, %v2894_v10 }
 0x13e   : > { %2236 = vst [vmem:[%s2914_s10 + $0x40] sm:$0xff] %v2192_v4   ;;  %v1613_v21 = vadd.f32 %v2899_v13, %v1574_v17  ;;  %v1575_v22 = vmul.f32 %v2433_v18, %v2894_v10 }
 0x13f   : > { %v1616_v23 = vadd.f32 %v2899_v13, %v1577_v20  ;;  %v1647_v28 = vmax.f32 %v1615_v19, 0.0 }
 0x140   : > { %v2364_v24 = vpop.f32.mrb[24].mxu1  ;;  %v1614_v25 = vadd.f32 %v2899_v13, %v1575_v22  ;;  %v2400_v26 = vpop.f32.mrb[24].mxu0  ;;  %v1645_v31 = vmax.f32 %v1613_v21, 0.0 }
 0x141   : > { %v955_v27 = vpop.f32.mrb[25].mxu1  ;;  %v1648_v5 = vmax.f32 %v1616_v23, 0.0  ;;  %v2434_v29 = vadd.f32 %v2400_v26, %v2364_v24  ;;  %v1388_v6 = vpop.f32.mrb[25].mxu0 }
 0x142   : > { %v2365_v30 = vpop.f32.mrb[26].mxu1  ;;  %v1646_v32 = vmax.f32 %v1614_v25, 0.0  ;;  %v2435_v7 = vadd.f32 %v1388_v6, %v955_v27  ;;  %v2401_v33 = vpop.f32.mrb[26].mxu0 }
 0x143   : > { %v958_v34 = vpop.f32.mrb[27].mxu1  ;;  %v2207_v35 = vpack.c.bf16 %v1648_v5, %v1647_v28  ;;  %v1580_v36 = vmul.f32 %v2434_v29, %v2894_v10  ;;  %v2436_v8 = vadd.f32 %v2401_v33, %v2365_v30  ;;  %v1391_v37 = vpop.f32.mrb[27].mxu0 }
 0x144   : > { %v2202_v38 = vpack.c.bf16 %v1646_v32, %v1645_v31  ;;  %v1578_v39 = vmul.f32 %v2435_v7, %v2894_v10  ;;  %v2437_v40 = vadd.f32 %v1391_v37, %v958_v34 }
 0x145   : > { %2239 = vst [vmem:[%s2914_s10 + $0x58] sm:$0xff] %v2207_v35   ;;  %v1619_v41 = vadd.f32 %v2899_v13, %v1580_v36  ;;  %v1581_v42 = vmul.f32 %v2436_v8, %v2894_v10 }
 0x146   : > { %2238 = vst [vmem:[%s2914_s10 + $0x50] sm:$0xff] %v2202_v38   ;;  %v1617_v43 = vadd.f32 %v2899_v13, %v1578_v39  ;;  %v1579_v44 = vmul.f32 %v2437_v40, %v2894_v10 }
 0x147   : > { %v1620_v45 = vadd.f32 %v2899_v13, %v1581_v42  ;;  %v1651_v50 = vmax.f32 %v1619_v41, 0.0 }
 0x148   : > { %v2368_v46 = vpop.f32.mrb[28].mxu1  ;;  %v1618_v47 = vadd.f32 %v2899_v13, %v1579_v44  ;;  %v2404_v48 = vpop.f32.mrb[28].mxu0  ;;  %v1649_v55 = vmax.f32 %v1617_v43, 0.0 }
 0x149   : > { %v971_v49 = vpop.f32.mrb[29].mxu1  ;;  %v1652_v51 = vmax.f32 %v1620_v45, 0.0  ;;  %v2438_v52 = vadd.f32 %v2404_v48, %v2368_v46  ;;  %v1404_v53 = vpop.f32.mrb[29].mxu0 }
 0x14a   : > { %v2369_v54 = vpop.f32.mrb[30].mxu1  ;;  %v1650_v56 = vmax.f32 %v1618_v47, 0.0  ;;  %v2439_v57 = vadd.f32 %v1404_v53, %v971_v49  ;;  %v2405_v58 = vpop.f32.mrb[30].mxu0 }
 0x14b   : > { %v974_v59 = vpop.f32.mrb[31].mxu1  ;;  %v2217_v60 = vpack.c.bf16 %v1652_v51, %v1651_v50  ;;  %v1584_v61 = vmul.f32 %v2438_v52, %v2894_v10  ;;  %v2440_v62 = vadd.f32 %v2405_v58, %v2369_v54  ;;  %v1407_v63 = vpop.f32.mrb[31].mxu0 }
 0x14c   : > { %v2212_v0 = vpack.c.bf16 %v1650_v56, %v1649_v55  ;;  %v1582_v9 = vmul.f32 %v2439_v57, %v2894_v10  ;;  %v2441_v1 = vadd.f32 %v1407_v63, %v974_v59 }
 0x14d   : > { %2241 = vst [vmem:[%s2914_s10 + $0x68] sm:$0xff] %v2217_v60   ;;  %v1623_v11 = vadd.f32 %v2899_v13, %v1584_v61  ;;  %v1585_v2 = vmul.f32 %v2440_v62, %v2894_v10 }
 0x14e   : > { %2240 = vst [vmem:[%s2914_s10 + $0x60] sm:$0xff] %v2212_v0   ;;  %v1621_v12 = vadd.f32 %v2899_v13, %v1582_v9  ;;  %v1583_v3 = vmul.f32 %v2441_v1, %v2894_v10 }
 0x14f   : > { %v1624_v14 = vadd.f32 %v2899_v13, %v1585_v2  ;;  %v1655_v16 = vmax.f32 %v1623_v11, 0.0 }
 0x150   : > { %v1622_v15 = vadd.f32 %v2899_v13, %v1583_v3  ;;  %v1653_v17 = vmax.f32 %v1621_v12, 0.0 }
 0x151   : > { %v1656_v4 = vmax.f32 %v1624_v14, 0.0 }
 0x152   : > { %v1654_v18 = vmax.f32 %v1622_v15, 0.0 }
 0x153   : > { %v2227_v19 = vpack.c.bf16 %v1656_v4, %v1655_v16 }
 0x154   : > { %v2222_v10 = vpack.c.bf16 %v1654_v18, %v1653_v17 }
 0x155   : > { %2243 = vst [vmem:[%s2914_s10 + $0x78] sm:$0xff] %v2227_v19  }
 0x156   : > { %2242 = vst [vmem:[%s2914_s10 + $0x70] sm:$0xff] %v2222_v10  }
 0x157   : > { %2603 = shalt.err (!%p2600_p5)
}
 0x158   : > { %s2604_s30 = scalar_lea.hbm %s2994_s21, 2048  ;;  %s2608_s7 = scalar_lea.hbm %s3052_s4, 4096 }
 0x159   : > { %p2605_p6 = scmp.ne.s32.totalorder %s2994_s21, %s2604_s30  ;;  %p2609_p10 = scmp.lt.u32.totalorder %s2994_s21, %s3052_s4 }
 0x15a   : > { %p2610_p11 = scmp.lt.u32.totalorder %s2608_s7, %s2604_s30  ;;  %p2612_p13 = scmp.lt.u32.totalorder %s2604_s30, %s2994_s21 }
 0x15b   : > { %p2606_p7 = pnand %p2605_p6, %p2738_p4 }
 0x15c   : > { %p2611_p12 = por %p2610_p11, %p2609_p10 }
 0x15d   : > { %p2607_p9 = pneg %p2606_p7 }
 0x15e   : > { %p2613_p0 = por %p2612_p13, %p2611_p12 }
 0x160   : > { %p2614_p1 = pnand %p2613_p0, %p2607_p9 }
 0x162   : > { %2617 = shalt.err (!%p2614_p1)
}
 0x163   : > { %s2671_s10 = smov 64   ;;  %s2672_s11 = smov 4  }
 0x164   : > { %2479 = dma.vmem_to_hbm [thread:$0]  (%p2738_p4), %s2996_s12, 2048, %s2994_s21, %s3002_s18, %s2671_s10, %s2671_s10, %s2672_s11  }
 0x165 PF: > { %p2485_p2 = scmp.ge.s32.totalorder %s2668_s20, 2  ;;  %s1849_s13 = sand.u32 1, %s2648_s15  }
 0x166   : > { %s1850_s14 = scalar_lea.sflag [#allocation4], %s1849_s13 }
 0x167   : > { %p2482_p3 = pnand %p2485_p2, %p2745_p8 }
 0x169   : > { %2643 = dma.done.wait (!%p2482_p3), %s1850_s14, 2048  }
 0x16a   : > { %2645 = vsyncadd (!%p2482_p3), %s1850_s14, 4294965248  ;;  %s17_s20 = sadd.s32 1, %s2668_s20   ;;  %s3055_s15 = smov %s2652_s16 }
 0x16b   : > { %p14_p5 = scmp.ge.s32.totalorder %s17_s20, 4   ;;  %s3056_s16 = smov %s2656_s17 }
 0x16c   : > { %s3057_s17 = smov %s2751_s28  ;;  %s3058_s18 = smov %s2664_s19 }
 0x16d   : > { %s3059_s19 = smov %s3061_s23  ;;  %16 = sbr.rel (!%p14_p5) target bundleno = 4 (0x4), region = 82 }
 0x174   :  { %1855 = vsyncpa [#allocation4], 1 }
 0x175   :  { %1857 = vsyncpa [#allocation4 + $0x1], 1 }

</bundles_post_ra>
